<compile_context>
chip_gen: v6e
topology: v6e:2x2x1
jax: 0.10.0
libtpu: 0.0.40
codegen_flags: <defaults>
</compile_context>

<pallas_src>
import functools
import math

import jax
import jax.numpy as jnp
from jax.experimental import pallas as pl
from jax.experimental.pallas import tpu as pltpu

OUT_BINS = 5  # AdaptiveAvgPool1d(5) / AdaptiveMaxPool1d(5)
NUM_FEATS = 4 * OUT_BINS  # cat(ave_mix, max_mix, ave_s, max_s) -> 20


def _adaptive_bins(length: int, out_size: int):
    """PyTorch adaptive pooling bins: [floor(i*L/O), ceil((i+1)*L/O))."""
    assert length >= out_size, (
        f"adaptive pool needs L >= {out_size}, got L={length}")
    bins = []
    for i in range(out_size):
        start = (i * length) // out_size
        end = math.ceil((i + 1) * length / out_size)
        bins.append((start, end))
    return tuple(bins)


def _round_up(x: int, m: int) -> int:
    return -(-x // m) * m


def _pick_batch_tile(B: int, L: int) -> int:
    # Per-step VMEM footprint ~ 2 inputs x 2 pipeline buffers x TB*L*4 B plus
    # in-kernel f32 intermediates (~2 x TB*L*4 B).  Keep TB*L <= ~0.5M f32
    # elements (~12 MiB total) -> comfortable under the 32-MiB default scoped
    # VMEM on v5e/v6e/v7x while each step still streams ~4 MiB (near the
    # measured 85%+ of HBM roofline).  Cap at 512 rows.
    budget_elems = 512 * 1024
    rows = min(512, max(8, budget_elems // max(L, 1)))
    rows = max(8, (rows // 8) * 8)
    return min(rows, _round_up(B, 8))


def export_gap_kernel(wb_ref, mix_ref, src_ref, out_ref, *, bins):
    """wb_ref: SMEM f32[21] = [w[1]-w[0] (20), b[1]-b[0]].

    mix_ref/src_ref: (TB, L) tiles, native dtype.  out_ref: (TB, 2) f32.
    Rows beyond the true batch in a padded last block hold don't-care data;
    their outputs are masked off by Pallas on writeback.
    """
    mix = mix_ref[...].astype(jnp.float32)   # (TB, L)
    src = src_ref[...].astype(jnp.float32)   # (TB, L)

    def pool(x):
        avgs = [jnp.mean(x[:, s:e], axis=1, keepdims=True) for (s, e) in bins]
        maxs = [jnp.max(x[:, s:e], axis=1, keepdims=True) for (s, e) in bins]
        return avgs, maxs

    ave_mix, max_mix = pool(mix)
    ave_s, max_s = pool(src)

    # torch.cat order: (ave_mix, max_mix, ave_s, max_s) -> 20 (TB, 1) columns.
    feats = ave_mix + max_mix + ave_s + max_s

    # 2-class softmax == sigmoid of the logit difference:
    #   d = (w[1]-w[0]) . feat + (b[1]-b[0])
    # Scalar weights from SMEM broadcast over (TB, 1) vectors on the VPU
    # (no MXU matmul, no 20-wide lane concat).
    d = wb_ref[0] * feats[0]
    for k in range(1, NUM_FEATS):
        d = d + wb_ref[k] * feats[k]
    d = d + wb_ref[NUM_FEATS]

    p1 = 1.0 / (1.0 + jnp.exp(-d))   # softmax(dim=1)[:, 1]
    p0 = 1.0 / (1.0 + jnp.exp(d))    # softmax(dim=1)[:, 0]
    out_ref[...] = jnp.concatenate([p0, p1], axis=1).astype(out_ref.dtype)


def export_gap(feature_src_mix, feature_src, weight, bias, *, batch_tile=None):
    """weight: (2, 20) as in nn.Linear(20, 2); bias: (2,). Eval-mode dropout."""
    B, L = feature_src_mix.shape
    assert feature_src.shape == (B, L)
    bins = _adaptive_bins(L, OUT_BINS)

    tb = batch_tile if batch_tile is not None else _pick_batch_tile(B, L)
    assert tb % 8 == 0 and tb > 0

    # Flat scalar table for SMEM: [w[1]-w[0] (20 entries), b[1]-b[0]].
    w = weight.astype(jnp.float32)
    b = bias.astype(jnp.float32)
    wb = jnp.concatenate([w[1] - w[0], (b[1] - b[0])[None]], axis=0)  # (21,)

    kernel = functools.partial(export_gap_kernel, bins=bins)
    grid = (pl.cdiv(B, tb),)  # last block padded by Pallas; no host-side jnp.pad
    out = pl.pallas_call(
        kernel,
        out_shape=jax.ShapeDtypeStruct((B, 2), jnp.float32),
        grid=grid,
        in_specs=[
            pl.BlockSpec(memory_space=pltpu.MemorySpace.SMEM),   # wb (whole)
            pl.BlockSpec((tb, L), lambda i: (i, 0)),             # mix tile
            pl.BlockSpec((tb, L), lambda i: (i, 0)),             # src tile
        ],
        out_specs=pl.BlockSpec((tb, 2), lambda i: (i, 0)),
        compiler_params=pltpu.CompilerParams(
            dimension_semantics=("parallel",)),
    )(wb, feature_src_mix, feature_src)
    return out


def _reference(feature_src_mix, feature_src, weight, bias):
    """Pure-JAX reference replicating the PyTorch forward (eval mode)."""
    _, L = feature_src_mix.shape
    bins = _adaptive_bins(L, OUT_BINS)

    def pool(x):
        avg = jnp.concatenate(
            [jnp.mean(x[:, s:e], axis=1, keepdims=True) for (s, e) in bins], axis=1)
        mx = jnp.concatenate(
            [jnp.max(x[:, s:e], axis=1, keepdims=True) for (s, e) in bins], axis=1)
        return avg, mx

    ave_mix, max_mix = pool(feature_src_mix)
    ave_s, max_s = pool(feature_src)
    feat = jnp.concatenate([ave_mix, max_mix, ave_s, max_s], axis=1)
    logits = feat @ weight.T + bias
    return jax.nn.softmax(logits, axis=1)


if __name__ == "__main__":
    key = jax.random.PRNGKey(0)
    k_mix, k_src, k_w, k_b, k_mix2, k_src2 = jax.random.split(key, 6)

    # nn.Linear(20, 2) params, deterministic synthetic init (uniform +/- 1/sqrt(20)).
    bound = 1.0 / math.sqrt(20.0)
    weight = jax.random.uniform(k_w, (2, 20), jnp.float32, -bound, bound)
    bias = jax.random.uniform(k_b, (2,), jnp.float32, -bound, bound)

    # Case 1: tiny shapes (batch=2, feature length=16; bins overlap).
    # Exercises a padded block (block rows 8 > B=2) with masked output writes.
    B1, L1 = 2, 16
    mix1 = jax.random.normal(k_mix, (B1, L1), dtype=jnp.float32)
    src1 = jax.random.normal(k_src, (B1, L1), dtype=jnp.float32)
    out1 = jax.block_until_ready(export_gap(mix1, src1, weight, bias))
    ref1 = _reference(mix1, src1, weight, bias)
    assert out1.shape == (B1, 2)
    assert jnp.allclose(out1, ref1, atol=1e-5, rtol=1e-5), (out1, ref1)

    # Case 2: exercises the batch grid (3 steps of 8) with a ragged last block.
    B2, L2 = 20, 37
    mix2 = jax.random.normal(k_mix2, (B2, L2), dtype=jnp.float32)
    src2 = jax.random.normal(k_src2, (B2, L2), dtype=jnp.float32)
    out2 = jax.block_until_ready(export_gap(mix2, src2, weight, bias, batch_tile=8))
    ref2 = _reference(mix2, src2, weight, bias)
    assert out2.shape == (B2, 2)
    assert jnp.allclose(out2, ref2, atol=1e-5, rtol=1e-5), (out2, ref2)

    print("KERNEL_OK")
</pallas_src>

<mosaic_0001>
module attributes {stable_mosaic.version = 11 : i64} {
  func.func @export_gap_kernel(%arg0: i32, %arg1: memref<21xf32, #tpu.memory_space<smem>>, %arg2: memref<8x16xf32, #tpu.memory_space<vmem>>, %arg3: memref<8x16xf32, #tpu.memory_space<vmem>>, %arg4: memref<8x2xf32, #tpu.memory_space<vmem>>) attributes {dimension_semantics = [#tpu.dimension_semantics<parallel>], iteration_bounds = array<i64: 1>, scalar_prefetch = 0 : i64, scratch_operands = 0 : i64, tpu.core_type = #tpu.core_type<tc>, window_params = [{transform_indices = @transform_0, window_bounds = array<i64: 21>}, {transform_indices = @transform_1, window_bounds = array<i64: 8, 16>}, {transform_indices = @transform_2, window_bounds = array<i64: 8, 16>}, {transform_indices = @transform_3, window_bounds = array<i64: 8, 2>}]} {
    %c0 = arith.constant 0 : index
    %c0_0 = arith.constant 0 : index
    %0 = vector.load %arg2[%c0, %c0_0] : memref<8x16xf32, #tpu.memory_space<vmem>>, vector<8x16xf32>
    %c0_1 = arith.constant 0 : index
    %c0_2 = arith.constant 0 : index
    %1 = vector.load %arg3[%c0_1, %c0_2] : memref<8x16xf32, #tpu.memory_space<vmem>>, vector<8x16xf32>
    %2 = vector.extract_strided_slice %0 {offsets = [0, 0], sizes = [8, 4], strides = [1, 1]} : vector<8x16xf32> to vector<8x4xf32>
    %cst = arith.constant dense<0.000000e+00> : vector<8xf32>
    %3 = vector.multi_reduction <add>, %2, %cst [1] : vector<8x4xf32> to vector<8xf32>
    %4 = vector.shape_cast %3 : vector<8xf32> to vector<8x1xf32>
    %cst_3 = arith.constant 4.000000e+00 : f32
    %5 = vector.broadcast %cst_3 : f32 to vector<8x1xf32>
    %6 = arith.divf %4, %5 : vector<8x1xf32>
    %7 = vector.extract_strided_slice %0 {offsets = [0, 3], sizes = [8, 4], strides = [1, 1]} : vector<8x16xf32> to vector<8x4xf32>
    %cst_4 = arith.constant dense<0.000000e+00> : vector<8xf32>
    %8 = vector.multi_reduction <add>, %7, %cst_4 [1] : vector<8x4xf32> to vector<8xf32>
    %9 = vector.shape_cast %8 : vector<8xf32> to vector<8x1xf32>
    %cst_5 = arith.constant 4.000000e+00 : f32
    %10 = vector.broadcast %cst_5 : f32 to vector<8x1xf32>
    %11 = arith.divf %9, %10 : vector<8x1xf32>
    %12 = vector.extract_strided_slice %0 {offsets = [0, 6], sizes = [8, 4], strides = [1, 1]} : vector<8x16xf32> to vector<8x4xf32>
    %cst_6 = arith.constant dense<0.000000e+00> : vector<8xf32>
    %13 = vector.multi_reduction <add>, %12, %cst_6 [1] : vector<8x4xf32> to vector<8xf32>
    %14 = vector.shape_cast %13 : vector<8xf32> to vector<8x1xf32>
    %cst_7 = arith.constant 4.000000e+00 : f32
    %15 = vector.broadcast %cst_7 : f32 to vector<8x1xf32>
    %16 = arith.divf %14, %15 : vector<8x1xf32>
    %17 = vector.extract_strided_slice %0 {offsets = [0, 9], sizes = [8, 4], strides = [1, 1]} : vector<8x16xf32> to vector<8x4xf32>
    %cst_8 = arith.constant dense<0.000000e+00> : vector<8xf32>
    %18 = vector.multi_reduction <add>, %17, %cst_8 [1] : vector<8x4xf32> to vector<8xf32>
    %19 = vector.shape_cast %18 : vector<8xf32> to vector<8x1xf32>
    %cst_9 = arith.constant 4.000000e+00 : f32
    %20 = vector.broadcast %cst_9 : f32 to vector<8x1xf32>
    %21 = arith.divf %19, %20 : vector<8x1xf32>
    %22 = vector.extract_strided_slice %0 {offsets = [0, 12], sizes = [8, 4], strides = [1, 1]} : vector<8x16xf32> to vector<8x4xf32>
    %cst_10 = arith.constant dense<0.000000e+00> : vector<8xf32>
    %23 = vector.multi_reduction <add>, %22, %cst_10 [1] : vector<8x4xf32> to vector<8xf32>
    %24 = vector.shape_cast %23 : vector<8xf32> to vector<8x1xf32>
    %cst_11 = arith.constant 4.000000e+00 : f32
    %25 = vector.broadcast %cst_11 : f32 to vector<8x1xf32>
    %26 = arith.divf %24, %25 : vector<8x1xf32>
    %27 = vector.extract_strided_slice %0 {offsets = [0, 0], sizes = [8, 4], strides = [1, 1]} : vector<8x16xf32> to vector<8x4xf32>
    %cst_12 = arith.constant dense<0xFF800000> : vector<8xf32>
    %28 = vector.multi_reduction <maximumf>, %27, %cst_12 [1] : vector<8x4xf32> to vector<8xf32>
    %29 = vector.shape_cast %28 : vector<8xf32> to vector<8x1xf32>
    %30 = vector.extract_strided_slice %0 {offsets = [0, 3], sizes = [8, 4], strides = [1, 1]} : vector<8x16xf32> to vector<8x4xf32>
    %cst_13 = arith.constant dense<0xFF800000> : vector<8xf32>
    %31 = vector.multi_reduction <maximumf>, %30, %cst_13 [1] : vector<8x4xf32> to vector<8xf32>
    %32 = vector.shape_cast %31 : vector<8xf32> to vector<8x1xf32>
    %33 = vector.extract_strided_slice %0 {offsets = [0, 6], sizes = [8, 4], strides = [1, 1]} : vector<8x16xf32> to vector<8x4xf32>
    %cst_14 = arith.constant dense<0xFF800000> : vector<8xf32>
    %34 = vector.multi_reduction <maximumf>, %33, %cst_14 [1] : vector<8x4xf32> to vector<8xf32>
    %35 = vector.shape_cast %34 : vector<8xf32> to vector<8x1xf32>
    %36 = vector.extract_strided_slice %0 {offsets = [0, 9], sizes = [8, 4], strides = [1, 1]} : vector<8x16xf32> to vector<8x4xf32>
    %cst_15 = arith.constant dense<0xFF800000> : vector<8xf32>
    %37 = vector.multi_reduction <maximumf>, %36, %cst_15 [1] : vector<8x4xf32> to vector<8xf32>
    %38 = vector.shape_cast %37 : vector<8xf32> to vector<8x1xf32>
    %39 = vector.extract_strided_slice %0 {offsets = [0, 12], sizes = [8, 4], strides = [1, 1]} : vector<8x16xf32> to vector<8x4xf32>
    %cst_16 = arith.constant dense<0xFF800000> : vector<8xf32>
    %40 = vector.multi_reduction <maximumf>, %39, %cst_16 [1] : vector<8x4xf32> to vector<8xf32>
    %41 = vector.shape_cast %40 : vector<8xf32> to vector<8x1xf32>
    %42 = vector.extract_strided_slice %1 {offsets = [0, 0], sizes = [8, 4], strides = [1, 1]} : vector<8x16xf32> to vector<8x4xf32>
    %cst_17 = arith.constant dense<0.000000e+00> : vector<8xf32>
    %43 = vector.multi_reduction <add>, %42, %cst_17 [1] : vector<8x4xf32> to vector<8xf32>
    %44 = vector.shape_cast %43 : vector<8xf32> to vector<8x1xf32>
    %cst_18 = arith.constant 4.000000e+00 : f32
    %45 = vector.broadcast %cst_18 : f32 to vector<8x1xf32>
    %46 = arith.divf %44, %45 : vector<8x1xf32>
    %47 = vector.extract_strided_slice %1 {offsets = [0, 3], sizes = [8, 4], strides = [1, 1]} : vector<8x16xf32> to vector<8x4xf32>
    %cst_19 = arith.constant dense<0.000000e+00> : vector<8xf32>
    %48 = vector.multi_reduction <add>, %47, %cst_19 [1] : vector<8x4xf32> to vector<8xf32>
    %49 = vector.shape_cast %48 : vector<8xf32> to vector<8x1xf32>
    %cst_20 = arith.constant 4.000000e+00 : f32
    %50 = vector.broadcast %cst_20 : f32 to vector<8x1xf32>
    %51 = arith.divf %49, %50 : vector<8x1xf32>
    %52 = vector.extract_strided_slice %1 {offsets = [0, 6], sizes = [8, 4], strides = [1, 1]} : vector<8x16xf32> to vector<8x4xf32>
    %cst_21 = arith.constant dense<0.000000e+00> : vector<8xf32>
    %53 = vector.multi_reduction <add>, %52, %cst_21 [1] : vector<8x4xf32> to vector<8xf32>
    %54 = vector.shape_cast %53 : vector<8xf32> to vector<8x1xf32>
    %cst_22 = arith.constant 4.000000e+00 : f32
    %55 = vector.broadcast %cst_22 : f32 to vector<8x1xf32>
    %56 = arith.divf %54, %55 : vector<8x1xf32>
    %57 = vector.extract_strided_slice %1 {offsets = [0, 9], sizes = [8, 4], strides = [1, 1]} : vector<8x16xf32> to vector<8x4xf32>
    %cst_23 = arith.constant dense<0.000000e+00> : vector<8xf32>
    %58 = vector.multi_reduction <add>, %57, %cst_23 [1] : vector<8x4xf32> to vector<8xf32>
    %59 = vector.shape_cast %58 : vector<8xf32> to vector<8x1xf32>
    %cst_24 = arith.constant 4.000000e+00 : f32
    %60 = vector.broadcast %cst_24 : f32 to vector<8x1xf32>
    %61 = arith.divf %59, %60 : vector<8x1xf32>
    %62 = vector.extract_strided_slice %1 {offsets = [0, 12], sizes = [8, 4], strides = [1, 1]} : vector<8x16xf32> to vector<8x4xf32>
    %cst_25 = arith.constant dense<0.000000e+00> : vector<8xf32>
    %63 = vector.multi_reduction <add>, %62, %cst_25 [1] : vector<8x4xf32> to vector<8xf32>
    %64 = vector.shape_cast %63 : vector<8xf32> to vector<8x1xf32>
    %cst_26 = arith.constant 4.000000e+00 : f32
    %65 = vector.broadcast %cst_26 : f32 to vector<8x1xf32>
    %66 = arith.divf %64, %65 : vector<8x1xf32>
    %67 = vector.extract_strided_slice %1 {offsets = [0, 0], sizes = [8, 4], strides = [1, 1]} : vector<8x16xf32> to vector<8x4xf32>
    %cst_27 = arith.constant dense<0xFF800000> : vector<8xf32>
    %68 = vector.multi_reduction <maximumf>, %67, %cst_27 [1] : vector<8x4xf32> to vector<8xf32>
    %69 = vector.shape_cast %68 : vector<8xf32> to vector<8x1xf32>
    %70 = vector.extract_strided_slice %1 {offsets = [0, 3], sizes = [8, 4], strides = [1, 1]} : vector<8x16xf32> to vector<8x4xf32>
    %cst_28 = arith.constant dense<0xFF800000> : vector<8xf32>
    %71 = vector.multi_reduction <maximumf>, %70, %cst_28 [1] : vector<8x4xf32> to vector<8xf32>
    %72 = vector.shape_cast %71 : vector<8xf32> to vector<8x1xf32>
    %73 = vector.extract_strided_slice %1 {offsets = [0, 6], sizes = [8, 4], strides = [1, 1]} : vector<8x16xf32> to vector<8x4xf32>
    %cst_29 = arith.constant dense<0xFF800000> : vector<8xf32>
    %74 = vector.multi_reduction <maximumf>, %73, %cst_29 [1] : vector<8x4xf32> to vector<8xf32>
    %75 = vector.shape_cast %74 : vector<8xf32> to vector<8x1xf32>
    %76 = vector.extract_strided_slice %1 {offsets = [0, 9], sizes = [8, 4], strides = [1, 1]} : vector<8x16xf32> to vector<8x4xf32>
    %cst_30 = arith.constant dense<0xFF800000> : vector<8xf32>
    %77 = vector.multi_reduction <maximumf>, %76, %cst_30 [1] : vector<8x4xf32> to vector<8xf32>
    %78 = vector.shape_cast %77 : vector<8xf32> to vector<8x1xf32>
    %79 = vector.extract_strided_slice %1 {offsets = [0, 12], sizes = [8, 4], strides = [1, 1]} : vector<8x16xf32> to vector<8x4xf32>
    %cst_31 = arith.constant dense<0xFF800000> : vector<8xf32>
    %80 = vector.multi_reduction <maximumf>, %79, %cst_31 [1] : vector<8x4xf32> to vector<8xf32>
    %81 = vector.shape_cast %80 : vector<8xf32> to vector<8x1xf32>
    %c0_32 = arith.constant 0 : index
    %82 = memref.load %arg1[%c0_32] : memref<21xf32, #tpu.memory_space<smem>>
    %83 = vector.broadcast %82 : f32 to vector<8x1xf32>
    %84 = arith.mulf %83, %6 : vector<8x1xf32>
    %c1 = arith.constant 1 : index
    %85 = memref.load %arg1[%c1] : memref<21xf32, #tpu.memory_space<smem>>
    %86 = vector.broadcast %85 : f32 to vector<8x1xf32>
    %87 = arith.mulf %86, %11 : vector<8x1xf32>
    %88 = arith.addf %84, %87 : vector<8x1xf32>
    %c2 = arith.constant 2 : index
    %89 = memref.load %arg1[%c2] : memref<21xf32, #tpu.memory_space<smem>>
    %90 = vector.broadcast %89 : f32 to vector<8x1xf32>
    %91 = arith.mulf %90, %16 : vector<8x1xf32>
    %92 = arith.addf %88, %91 : vector<8x1xf32>
    %c3 = arith.constant 3 : index
    %93 = memref.load %arg1[%c3] : memref<21xf32, #tpu.memory_space<smem>>
    %94 = vector.broadcast %93 : f32 to vector<8x1xf32>
    %95 = arith.mulf %94, %21 : vector<8x1xf32>
    %96 = arith.addf %92, %95 : vector<8x1xf32>
    %c4 = arith.constant 4 : index
    %97 = memref.load %arg1[%c4] : memref<21xf32, #tpu.memory_space<smem>>
    %98 = vector.broadcast %97 : f32 to vector<8x1xf32>
    %99 = arith.mulf %98, %26 : vector<8x1xf32>
    %100 = arith.addf %96, %99 : vector<8x1xf32>
    %c5 = arith.constant 5 : index
    %101 = memref.load %arg1[%c5] : memref<21xf32, #tpu.memory_space<smem>>
    %102 = vector.broadcast %101 : f32 to vector<8x1xf32>
    %103 = arith.mulf %102, %29 : vector<8x1xf32>
    %104 = arith.addf %100, %103 : vector<8x1xf32>
    %c6 = arith.constant 6 : index
    %105 = memref.load %arg1[%c6] : memref<21xf32, #tpu.memory_space<smem>>
    %106 = vector.broadcast %105 : f32 to vector<8x1xf32>
    %107 = arith.mulf %106, %32 : vector<8x1xf32>
    %108 = arith.addf %104, %107 : vector<8x1xf32>
    %c7 = arith.constant 7 : index
    %109 = memref.load %arg1[%c7] : memref<21xf32, #tpu.memory_space<smem>>
    %110 = vector.broadcast %109 : f32 to vector<8x1xf32>
    %111 = arith.mulf %110, %35 : vector<8x1xf32>
    %112 = arith.addf %108, %111 : vector<8x1xf32>
    %c8 = arith.constant 8 : index
    %113 = memref.load %arg1[%c8] : memref<21xf32, #tpu.memory_space<smem>>
    %114 = vector.broadcast %113 : f32 to vector<8x1xf32>
    %115 = arith.mulf %114, %38 : vector<8x1xf32>
    %116 = arith.addf %112, %115 : vector<8x1xf32>
    %c9 = arith.constant 9 : index
    %117 = memref.load %arg1[%c9] : memref<21xf32, #tpu.memory_space<smem>>
    %118 = vector.broadcast %117 : f32 to vector<8x1xf32>
    %119 = arith.mulf %118, %41 : vector<8x1xf32>
    %120 = arith.addf %116, %119 : vector<8x1xf32>
    %c10 = arith.constant 10 : index
    %121 = memref.load %arg1[%c10] : memref<21xf32, #tpu.memory_space<smem>>
    %122 = vector.broadcast %121 : f32 to vector<8x1xf32>
    %123 = arith.mulf %122, %46 : vector<8x1xf32>
    %124 = arith.addf %120, %123 : vector<8x1xf32>
    %c11 = arith.constant 11 : index
    %125 = memref.load %arg1[%c11] : memref<21xf32, #tpu.memory_space<smem>>
    %126 = vector.broadcast %125 : f32 to vector<8x1xf32>
    %127 = arith.mulf %126, %51 : vector<8x1xf32>
    %128 = arith.addf %124, %127 : vector<8x1xf32>
    %c12 = arith.constant 12 : index
    %129 = memref.load %arg1[%c12] : memref<21xf32, #tpu.memory_space<smem>>
    %130 = vector.broadcast %129 : f32 to vector<8x1xf32>
    %131 = arith.mulf %130, %56 : vector<8x1xf32>
    %132 = arith.addf %128, %131 : vector<8x1xf32>
    %c13 = arith.constant 13 : index
    %133 = memref.load %arg1[%c13] : memref<21xf32, #tpu.memory_space<smem>>
    %134 = vector.broadcast %133 : f32 to vector<8x1xf32>
    %135 = arith.mulf %134, %61 : vector<8x1xf32>
    %136 = arith.addf %132, %135 : vector<8x1xf32>
    %c14 = arith.constant 14 : index
    %137 = memref.load %arg1[%c14] : memref<21xf32, #tpu.memory_space<smem>>
    %138 = vector.broadcast %137 : f32 to vector<8x1xf32>
    %139 = arith.mulf %138, %66 : vector<8x1xf32>
    %140 = arith.addf %136, %139 : vector<8x1xf32>
    %c15 = arith.constant 15 : index
    %141 = memref.load %arg1[%c15] : memref<21xf32, #tpu.memory_space<smem>>
    %142 = vector.broadcast %141 : f32 to vector<8x1xf32>
    %143 = arith.mulf %142, %69 : vector<8x1xf32>
    %144 = arith.addf %140, %143 : vector<8x1xf32>
    %c16 = arith.constant 16 : index
    %145 = memref.load %arg1[%c16] : memref<21xf32, #tpu.memory_space<smem>>
    %146 = vector.broadcast %145 : f32 to vector<8x1xf32>
    %147 = arith.mulf %146, %72 : vector<8x1xf32>
    %148 = arith.addf %144, %147 : vector<8x1xf32>
    %c17 = arith.constant 17 : index
    %149 = memref.load %arg1[%c17] : memref<21xf32, #tpu.memory_space<smem>>
    %150 = vector.broadcast %149 : f32 to vector<8x1xf32>
    %151 = arith.mulf %150, %75 : vector<8x1xf32>
    %152 = arith.addf %148, %151 : vector<8x1xf32>
    %c18 = arith.constant 18 : index
    %153 = memref.load %arg1[%c18] : memref<21xf32, #tpu.memory_space<smem>>
    %154 = vector.broadcast %153 : f32 to vector<8x1xf32>
    %155 = arith.mulf %154, %78 : vector<8x1xf32>
    %156 = arith.addf %152, %155 : vector<8x1xf32>
    %c19 = arith.constant 19 : index
    %157 = memref.load %arg1[%c19] : memref<21xf32, #tpu.memory_space<smem>>
    %158 = vector.broadcast %157 : f32 to vector<8x1xf32>
    %159 = arith.mulf %158, %81 : vector<8x1xf32>
    %160 = arith.addf %156, %159 : vector<8x1xf32>
    %c20 = arith.constant 20 : index
    %161 = memref.load %arg1[%c20] : memref<21xf32, #tpu.memory_space<smem>>
    %162 = vector.broadcast %161 : f32 to vector<8x1xf32>
    %163 = arith.addf %160, %162 : vector<8x1xf32>
    %cst_33 = arith.constant 0.000000e+00 : f32
    %164 = vector.broadcast %cst_33 : f32 to vector<8x1xf32>
    %165 = arith.subf %164, %163 : vector<8x1xf32>
    %166 = math.exp %165 : vector<8x1xf32>
    %cst_34 = arith.constant 1.000000e+00 : f32
    %167 = vector.broadcast %cst_34 : f32 to vector<8x1xf32>
    %168 = arith.addf %167, %166 : vector<8x1xf32>
    %cst_35 = arith.constant 1.000000e+00 : f32
    %169 = vector.broadcast %cst_35 : f32 to vector<8x1xf32>
    %170 = arith.divf %169, %168 : vector<8x1xf32>
    %171 = math.exp %163 : vector<8x1xf32>
    %cst_36 = arith.constant 1.000000e+00 : f32
    %172 = vector.broadcast %cst_36 : f32 to vector<8x1xf32>
    %173 = arith.addf %172, %171 : vector<8x1xf32>
    %cst_37 = arith.constant 1.000000e+00 : f32
    %174 = vector.broadcast %cst_37 : f32 to vector<8x1xf32>
    %175 = arith.divf %174, %173 : vector<8x1xf32>
    %176 = tpu.concatenate %175, %170 in 1 : vector<8x1xf32>, vector<8x1xf32> -> vector<8x2xf32>
    %c0_38 = arith.constant 0 : index
    %c0_39 = arith.constant 0 : index
    %177 = vector.load %arg4[%c0_38, %c0_39] : memref<8x2xf32, #tpu.memory_space<vmem>>, vector<8x2xf32>
    tpu.vector_store %arg4[%c0_38, %c0_39], %176 {strides = array<i32>} : memref<8x2xf32, #tpu.memory_space<vmem>>, vector<8x2xf32>,
    return
  }
  func.func @transform_0(%arg0: i32) -> i32 {
    %c0_i32 = arith.constant 0 : i32
    %c0_i32_0 = arith.constant 0 : i32
    return %c0_i32 : i32
  }
  func.func @transform_1(%arg0: i32) -> (i32, i32) {
    %c0_i32 = arith.constant 0 : i32
    %c0_i32_0 = arith.constant 0 : i32
    return %arg0, %c0_i32 : i32, i32
  }
  func.func @transform_2(%arg0: i32) -> (i32, i32) {
    %c0_i32 = arith.constant 0 : i32
    %c0_i32_0 = arith.constant 0 : i32
    return %arg0, %c0_i32 : i32, i32
  }
  func.func @transform_3(%arg0: i32) -> (i32, i32) {
    %c0_i32 = arith.constant 0 : i32
    %c0_i32_0 = arith.constant 0 : i32
    return %arg0, %c0_i32 : i32, i32
  }
}

</mosaic_0001>

<bundles_post_ra>
// kernel: tpu_custom_call.1
= control target key start
LH: loop header
LB: loop body
LE: loop exit
PB: predicated region body
PF: predicated region fallthrough
CT: control target
= control target key end

     0   :  { %8 = vsyncpa [#allocation5], 0  ;;  %s429_s0 = inlined_call_operand.hbm [shape: f32[21], index: 0, kind: input, shape index: {}]   ;;  %s430_s1 = inlined_call_operand.hbm [shape: f32[2,16], index: 1, kind: input, shape index: {}]   ;;  %s431_s2 = inlined_call_operand.vmem [shape: f32[2,16], index: 2, kind: input, shape index: {}]   ;;  %s432_s3 = inlined_call_operand.hbm [shape: f32[2,2], index: 3, kind: output, shape index: {}]  }
   0x1   :  { %9 = vsyncpa [#allocation3], 0 }
   0x2   :  { %10 = vsyncpa [#allocation4], 0  ;;  %s350_s12 = smov [#allocation2]  }
   0x3   :  { %18 = dma.hbm_to_smem %s429_s0, 16, %s350_s12, [#allocation5]  }
   0x4   :  { %23 = vsyncadd [#allocation3], 96  ;;  %s351_s15 = smov [#allocation6]  }
   0x5   :  { %s24_s16 = sshll.u32 %s351_s15, 4  ;;  %s25_s16 = int_to_ptr.vmem [resolvable:$true] %s24_s16 }
   0x6   :  { %s312_s17 = scalar_lea.vmem %s25_s16, 32  ;;  %s316_s18 = scalar_lea.vmem %s25_s16, 128 }
   0x7   :  { %p313_p0 = scmp.ne.s32.totalorder %s25_s16, %s312_s17  ;;  %p317_p1 = scmp.lt.s32.totalorder %s25_s16, %s25_s16 }
   0x8   :  { %p318_p2 = scmp.lt.s32.totalorder %s316_s18, %s312_s17 }
   0xa   :  { %p319_p3 = por %p318_p2, %p317_p1 }
   0xc   :  { %p320_p4 = pnand %p319_p3, %p313_p0 }
   0xe   :  { %323 = shalt.err (!%p320_p4)
}
   0xf   :  { %s352_s19 = smov 32   ;;  %s353_s20 = smov 2  }
  0x10   :  { %30 = dma.hbm_to_vmem [thread:$0]  %s430_s1, 32, %s25_s16, [#allocation3], %s352_s19, %s352_s19, %s353_s20  }
  0x11   :  { %344 = dma.done.wait [#allocation5], 16  }
  0x12   :  { %345 = vsyncadd [#allocation5], 4294967280 }
  0x13   :  { %346 = dma.done.wait [#allocation3], 128  }
  0x14   :  { %347 = vsyncadd [#allocation3], 4294967168 }
  0x15   :  { %39 = sfence }
  0x16   :  { %v40_v0 = vld [vmem:[#allocation6] sm:$0xff]  ;;  %vm42_vm0 = vcmask 31744   ;;  %s354_s0 = smov 122   ;;  %s355_s23 = smov 119   ;;  %vm80_vm1 = vcmask 56344   ;;  %vm84_vm2 = vcmask 80944  }
  0x17   :  { %v43_v1 = vsel %vm42_vm0, %v40_v0, 0.0  ;;  %56 = vrot.lane.b32.xlu1 %v40_v0, %s354_s0  ;;  %s356_s24 = smov 116   ;;  %v41_v2 = vld [vmem:[%s431_s2] sm:$0xff]  ;;  %s357_s1 = smov 125   ;;  %v77_v5 = vsel %vm42_vm0, %v40_v0, -inf  ;;  %v81_v7 = vsel %vm80_vm1, %v40_v0, -inf }
  0x18   :  { %44 = vadd.xlane.f32.xlu0 %v43_v1  ;;  %v85_v9 = vsel %vm84_vm2, %v40_v0, -inf  ;;  %vm88_vm3 = vcmask 105544   ;;  %vm92_vm4 = vcmask 130144   ;;  %v96_v17 = vsel %vm42_vm0, %v41_v2, 0.0  ;;  %s144_s2 = sld [smem:[#allocation2]] }
  0x19   :  { %v89_v12 = vsel %vm88_vm3, %v40_v0, -inf  ;;  %v93_v14 = vsel %vm92_vm4, %v40_v0, -inf  ;;  %v132_v26 = vsel %vm80_vm1, %v41_v2, -inf  ;;  %v129_v27 = vsel %vm42_vm0, %v41_v2, -inf  ;;  %s259_s27 = sld [smem:[#allocation2 + $0x1]] }
  0x1a   :  { %v138_v28 = vsel %vm88_vm3, %v41_v2, -inf  ;;  %v135_v29 = vsel %vm84_vm2, %v41_v2, -inf  ;;  %v141_v30 = vsel %vm92_vm4, %v41_v2, -inf  ;;  %s260_s28 = sld [smem:[#allocation2 + $0x2]]  ;;  %vm237_vm5 = vcmask 7168  }
  0x1b   :  { %63 = vrot.lane.b32.xlu1 %v40_v0, %s355_s23  ;;  %s261_s29 = sld [smem:[#allocation2 + $0x3]]  ;;  %vm239_vm6 = vcmask 15360  }
  0x1c   :  { %s262_s30 = sld [smem:[#allocation2 + $0x4]] }
  0x1d   :  { %s263_s4 = sld [smem:[#allocation2 + $0x5]] }
  0x1e   :  { %v145_v38 = vstv %s144_s2  ;;  %s264_s5 = sld [smem:[#allocation2 + $0x6]] }
  0x1f   :  { %70 = vrot.lane.b32.xlu1 %v40_v0, %s356_s24  ;;  %v148_v39 = vstv %s259_s27  ;;  %s265_s6 = sld [smem:[#allocation2 + $0x7]] }
  0x20   :  { %v152_v43 = vstv %s260_s28  ;;  %s266_s7 = sld [smem:[#allocation2 + $0x8]] }
  0x21   :  { %v156_v48 = vstv %s261_s29  ;;  %s267_s8 = sld [smem:[#allocation2 + $0x9]] }
  0x22   :  { %v160_v47 = vstv %s262_s30  ;;  %s268_s9 = sld [smem:[#allocation2 + $0xa]] }
  0x23   :  { %101 = vrot.lane.b32.xlu1 %v41_v2, %s357_s1  ;;  %v164_v57 = vstv %s263_s4  ;;  %s269_s10 = sld [smem:[#allocation2 + $0xb]] }
  0x24   :  { %v168_v59 = vstv %s264_s5  ;;  %s411_s11 = sld [smem:[#allocation2 + $0xc]] }
  0x25   :  { %v172_v63 = vstv %s265_s6  ;;  %s413_s12 = sld [smem:[#allocation2 + $0xd]] }
  0x26   :  { %s415_s13 = sld [smem:[#allocation2 + $0xe]] }
  0x27   :  { %108 = vrot.lane.b32.xlu1 %v41_v2, %s354_s0  ;;  %s417_s14 = sld [smem:[#allocation2 + $0xf]] }
  0x28   :  { %s274_s15 = sld [smem:[#allocation2 + $0x10]] }
  0x29   :  { %s275_s16 = sld [smem:[#allocation2 + $0x11]] }
  0x2a   :  { %s276_s17 = sld [smem:[#allocation2 + $0x12]] }
  0x2b   :  { %115 = vrot.lane.b32.xlu1 %v41_v2, %s355_s23  ;;  %s277_s18 = sld [smem:[#allocation2 + $0x13]] }
  0x2c   :  { %s278_s21 = sld [smem:[#allocation2 + $0x14]] }
  0x2e   :  { %49 = vrot.lane.b32.xlu0 %v40_v0, %s357_s1 }
  0x2f   :  { %122 = vrot.lane.b32.xlu1 %v41_v2, %s356_s24  ;;  %v176_v2 = vstv %s266_s7 }
  0x89   :  { %v57_v3 = vpop.permute.xlu1 %56 }
  0x8a   :  { %v59_v4 = vsel %vm42_vm0, %v57_v3, 0.0 }
  0x8b   :  { %60 = vadd.xlane.f32.xlu0 %v59_v4 }
  0x8d   :  { %v64_v6 = vpop.permute.xlu1 %63 }
  0x8e   :  { %v66_v22 = vsel %vm42_vm0, %v64_v6, 0.0 }
  0x8f   :  { %78 = vmax.xlane.f32.xlu0 %v77_v5 }
  0x91   :  { %v71_v8 = vpop.permute.xlu1 %70 }
  0x92   :  { %v73_v11 = vsel %vm42_vm0, %v71_v8, 0.0  ;;  %v184_v8 = vstv %s268_s9 }
  0x93   :  { %82 = vmax.xlane.f32.xlu0 %v81_v7  ;;  %v180_v7 = vstv %s267_s8 }
  0x95   :  { %v102_v10 = vpop.permute.xlu1 %101 }
  0x96   :  { %v104_v23 = vsel %vm42_vm0, %v102_v10, 0.0 }
  0x97   :  { %86 = vmax.xlane.f32.xlu0 %v85_v9 }
  0x99   :  { %v109_v13 = vpop.permute.xlu1 %108 }
  0x9a   :  { %v111_v20 = vsel %vm42_vm0, %v109_v13, 0.0 }
  0x9b   :  { %74 = vadd.xlane.f32.xlu0 %v73_v11 }
  0x9d   :  { %v116_v16 = vpop.permute.xlu1 %115 }
  0x9e   :  { %v118_v25 = vsel %vm42_vm0, %v116_v16, 0.0 }
  0x9f   :  { %90 = vmax.xlane.f32.xlu0 %v89_v12 }
  0xa1   :  { %v45_v15 = vpop.xlane.xlu0 %44  ;;  %v123_v21 = vpop.permute.xlu1 %122 }
  0xa2   :  { %v125_v24 = vsel %vm42_vm0, %v123_v21, 0.0  ;;  %v47_v37 = vmul.f32 0.25, %v45_v15  ;;  %v192_v21 = vstv %s411_s11 }
  0xa3   :  { %94 = vmax.xlane.f32.xlu0 %v93_v14 }
  0xa4   :  { %v146_v44 = vmul.f32 %v145_v38, %v47_v37 }
  0xa5   :  { %v50_v18 = vpop.permute.xlu0 %49 }
  0xa6   :  { %v52_v19 = vsel %vm42_vm0, %v50_v18, 0.0 }
  0xa7   :  { %53 = vadd.xlane.f32.xlu1 %v52_v19  ;;  %97 = vadd.xlane.f32.xlu0 %v96_v17  ;;  %v188_v17 = vstv %s269_s10 }
  0xab   :  { %67 = vadd.xlane.f32.xlu1 %v66_v22  ;;  %112 = vadd.xlane.f32.xlu0 %v111_v20 }
  0xaf   :  { %105 = vadd.xlane.f32.xlu1 %v104_v23  ;;  %126 = vadd.xlane.f32.xlu0 %v125_v24 }
  0xb3   :  { %119 = vadd.xlane.f32.xlu1 %v118_v25  ;;  %133 = vmax.xlane.f32.xlu0 %v132_v26 }
  0xb7   :  { %130 = vmax.xlane.f32.xlu1 %v129_v27  ;;  %139 = vmax.xlane.f32.xlu0 %v138_v28  ;;  %v196_v27 = vstv %s413_s12  ;;  %v200_v28 = vstv %s415_s13 }
  0xbb   :  { %136 = vmax.xlane.f32.xlu1 %v135_v29 }
  0xbf   :  { %142 = vmax.xlane.f32.xlu1 %v141_v30 }
 0x114   :  { %v61_v31 = vpop.xlane.xlu0 %60 }
 0x115   :  { %v62_v41 = vmul.f32 0.25, %v61_v31  ;;  %v204_v31 = vstv %s417_s14 }
 0x117   :  { %v153_v51 = vmul.f32 %v152_v43, %v62_v41  ;;  %v216_v43 = vstv %s276_s17 }
 0x118   :  { %v79_v32 = vpop.xlane.xlu0 %78 }
 0x119   :  { %v165_v61 = vmul.f32 %v164_v57, %v79_v32 }
 0x11c   :  { %v83_v33 = vpop.xlane.xlu0 %82 }
 0x11d   :  { %v169_v0 = vmul.f32 %v168_v59, %v83_v33 }
 0x120   :  { %v87_v34 = vpop.xlane.xlu0 %86 }
 0x121   :  { %v173_v4 = vmul.f32 %v172_v63, %v87_v34 }
 0x124   :  { %v75_v35 = vpop.xlane.xlu0 %74 }
 0x125   :  { %v76_v46 = vmul.f32 0.25, %v75_v35 }
 0x127   :  { %v161_v54 = vmul.f32 %v160_v47, %v76_v46  ;;  %v220_v47 = vstv %s277_s18 }
 0x128   :  { %v91_v36 = vpop.xlane.xlu0 %90 }
 0x129   :  { %v177_v11 = vmul.f32 %v176_v2, %v91_v36  ;;  %v208_v36 = vstv %s274_s15 }
 0x12c   :  { %v95_v50 = vpop.xlane.xlu0 %94 }
 0x12d   :  { %v181_v14 = vmul.f32 %v180_v7, %v95_v50 }
 0x130   :  { %v54_v40 = vpop.xlane.xlu1 %53  ;;  %v98_v60 = vpop.xlane.xlu0 %97 }
 0x131   :  { %v55_v42 = vmul.f32 0.25, %v54_v40  ;;  %v99_v6 = vmul.f32 0.25, %v98_v60  ;;  %v212_v40 = vstv %s275_s16 }
 0x133   :  { %v149_v45 = vmul.f32 %v148_v39, %v55_v42  ;;  %v185_v16 = vmul.f32 %v184_v8, %v99_v6 }
 0x134   :  { %v68_v49 = vpop.xlane.xlu1 %67  ;;  %v113_v9 = vpop.xlane.xlu0 %112 }
 0x135   :  { %v150_v52 = vadd.f32 %v149_v45, %v146_v44  ;;  %v69_v53 = vmul.f32 0.25, %v68_v49  ;;  %v114_v20 = vmul.f32 0.25, %v113_v9 }
 0x137   :  { %v154_v55 = vadd.f32 %v153_v51, %v150_v52  ;;  %v157_v56 = vmul.f32 %v156_v48, %v69_v53  ;;  %v193_v30 = vmul.f32 %v192_v21, %v114_v20 }
 0x138   :  { %v106_v3 = vpop.xlane.xlu1 %105  ;;  %v127_v18 = vpop.xlane.xlu0 %126 }
 0x139   :  { %v158_v58 = vadd.f32 %v157_v56, %v154_v55  ;;  %v107_v15 = vmul.f32 0.25, %v106_v3  ;;  %v128_v26 = vmul.f32 0.25, %v127_v18 }
 0x13b   :  { %v162_v62 = vadd.f32 %v161_v54, %v158_v58  ;;  %v189_v23 = vmul.f32 %v188_v17, %v107_v15  ;;  %v201_v35 = vmul.f32 %v200_v28, %v128_v26  ;;  %v224_v54 = vstv %s278_s21 }
 0x13c   :  { %v120_v12 = vpop.xlane.xlu1 %119  ;;  %v134_v32 = vpop.xlane.xlu0 %133 }
 0x13d   :  { %v166_v1 = vadd.f32 %v165_v61, %v162_v62  ;;  %v121_v25 = vmul.f32 0.25, %v120_v12  ;;  %v209_v42 = vmul.f32 %v208_v36, %v134_v32 }
 0x13f   :  { %v170_v5 = vadd.f32 %v169_v0, %v166_v1  ;;  %v197_v34 = vmul.f32 %v196_v27, %v121_v25 }
 0x140   :  { %v131_v22 = vpop.xlane.xlu1 %130  ;;  %v140_v44 = vpop.xlane.xlu0 %139 }
 0x141   :  { %v174_v10 = vadd.f32 %v173_v4, %v170_v5  ;;  %v205_v39 = vmul.f32 %v204_v31, %v131_v22  ;;  %v217_v50 = vmul.f32 %v216_v43, %v140_v44 }
 0x143   :  { %v178_v13 = vadd.f32 %v177_v11, %v174_v10 }
 0x144   :  { %v137_v37 = vpop.xlane.xlu1 %136 }
 0x145   :  { %v182_v19 = vadd.f32 %v181_v14, %v178_v13  ;;  %v213_v46 = vmul.f32 %v212_v40, %v137_v37 }
 0x147   :  { %v186_v24 = vadd.f32 %v185_v16, %v182_v19 }
 0x148   :  { %v143_v48 = vpop.xlane.xlu1 %142 }
 0x149   :  { %v190_v29 = vadd.f32 %v189_v23, %v186_v24  ;;  %v221_v52 = vmul.f32 %v220_v47, %v143_v48 }
 0x14b   :  { %v194_v33 = vadd.f32 %v193_v30, %v190_v29 }
 0x14d   :  { %v198_v38 = vadd.f32 %v197_v34, %v194_v33 }
 0x14f   :  { %v202_v41 = vadd.f32 %v201_v35, %v198_v38 }
 0x151   :  { %v206_v45 = vadd.f32 %v205_v39, %v202_v41 }
 0x153   :  { %v210_v49 = vadd.f32 %v209_v42, %v206_v45 }
 0x155   :  { %v214_v51 = vadd.f32 %v213_v46, %v210_v49 }
 0x157   :  { %v218_v53 = vadd.f32 %v217_v50, %v214_v51 }
 0x159   :  { %v222_v55 = vadd.f32 %v221_v52, %v218_v53 }
 0x15b   :  { %v225_v56 = vadd.f32 %v224_v54, %v222_v55 }
 0x15d   :  { %v226_v57 = vsub.f32 0.0, %v225_v56  ;;  %v232_v58 = vmul.f32 1.442695, %v225_v56 }
 0x15f   :  { %v227_v59 = vmul.f32 1.442695, %v226_v57  ;;  %288 = vpow2.f32 %v232_v58 }
 0x161   :  { %290 = vpow2.f32 %v227_v59 }
 0x16c   :  { %v289_v60 = vpop.eup %288 }
 0x16d   :  { %v234_v61 = vadd.f32 1.0, %v289_v60 }
 0x16e   :  { %v291_v62 = vpop.eup %290 }
 0x16f   :  { %v229_v63 = vadd.f32 1.0, %v291_v62  ;;  %292 = vrcp.f32 %v234_v61 }
 0x171   :  { %294 = vrcp.f32 %v229_v63 }
 0x17c   :  { %v293_v0 = vpop.eup %292 }
 0x17e   :  { %v295_v1 = vpop.eup %294 }
 0x17f   :  { %v238_v2 = vsel %vm237_vm5, %v293_v0, %v295_v1 }
 0x180   :  { %240 = vst.msk [vmem:[#allocation7] sm:$0xff] %vm239_vm6, %v238_v2 }
 0x181   :  { %245 = vsyncadd [#allocation4], 96  ;;  %s358_s22 = smov [#allocation7]  }
 0x182   :  { %s246_s0 = sshll.u32 %s358_s22, 4  ;;  %s247_s0 = int_to_ptr.vmem [resolvable:$true] %s246_s0 }
 0x183   :  { %s324_s23 = scalar_lea.vmem %s247_s0, 32  ;;  %s328_s24 = scalar_lea.vmem %s247_s0, 128 }
 0x184   :  { %p325_p5 = scmp.ne.s32.totalorder %s247_s0, %s324_s23  ;;  %p329_p6 = scmp.lt.s32.totalorder %s247_s0, %s247_s0 }
 0x185   :  { %p330_p7 = scmp.lt.s32.totalorder %s328_s24, %s324_s23 }
 0x187   :  { %p331_p8 = por %p330_p7, %p329_p6 }
 0x189   :  { %p332_p9 = pnand %p331_p8, %p325_p5 }
 0x18b   :  { %335 = shalt.err (!%p332_p9)
}
 0x18c   :  { %252 = dma.vmem_to_hbm [thread:$0]  %s247_s0, 32, %s432_s3, [#allocation4], %s352_s19, %s352_s19, %s353_s20  }
 0x18d   :  { %348 = dma.done.wait [#allocation4], 128  }
 0x18e   :  { %349 = vsyncadd [#allocation4], 4294967168 }
 0x18f   :  { %256 = vsyncpa [#allocation3], 1 }
 0x190   :  { %257 = vsyncpa [#allocation4], 1 }
 0x191   :  { %258 = vsyncpa [#allocation5], 1 }

</bundles_post_ra>
